<compile_context>
chip_gen: v6e
topology: v6e:2x2x1
jax: 0.10.0
libtpu: 0.0.40
codegen_flags: <defaults>
</compile_context>

<pallas_src>
import jax
import jax.numpy as jnp
from jax.experimental import pallas as pl
from jax.experimental.pallas import tpu as pltpu


def fixed_hidden_mlp_kernel(x_ref, wt_ref, b_ref, rw_ref, out_ref):
    x = x_ref[...]       # (2, 20)  f32
    wt = wt_ref[...]     # (20, 20) f32, (in_features, out_features) layout
    b = b_ref[...]       # (1, 20)  f32
    rw = rw_ref[...]     # (20, 20) f32

    # X = self.linear(X)
    h = jnp.dot(x, wt, preferred_element_type=jnp.float32) + b
    # X = F.relu(torch.mm(X, self.rand_weight) + 1)
    h = jnp.maximum(jnp.dot(h, rw, preferred_element_type=jnp.float32) + 1.0, 0.0)
    # X = self.linear(X)   (shared weights, second application)
    h = jnp.dot(h, wt, preferred_element_type=jnp.float32) + b

    # while X.abs().sum() > 1: X /= 2   ;   return X.sum()
    # Halving X halves abs().sum() and sum() identically, so only the two
    # scalar reductions matter.  The number of halvings is
    #   n = min { n >= 0 : s_abs * 2**-n <= 1 }
    # computed in closed form, with a corrective `where` so the strict `> 1`
    # comparison matches the original loop even when log2 rounds across an
    # integer boundary.  Multiplying by 2**-n is bit-identical to n
    # successive divisions by 2.
    s_abs = jnp.sum(jnp.abs(h), keepdims=True)   # (1, 1)
    s_sum = jnp.sum(h, keepdims=True)            # (1, 1)

    n = jnp.maximum(jnp.ceil(jnp.log2(jnp.maximum(s_abs, 1.0))), 0.0)
    scale = jnp.exp2(-n)
    too_big = s_abs * scale > 1.0                       # n one halving short
    too_small = jnp.logical_and(                        # n one halving too many
        jnp.logical_and(n > 0.0, s_abs * (scale * 2.0) <= 1.0),
        jnp.logical_not(too_big))
    scale = jnp.where(too_big, scale * 0.5,
                      jnp.where(too_small, scale * 2.0, scale))

    out_ref[0, 0] = (s_sum * scale)[0, 0]


def fixed_hidden_mlp(x, w, b, rand_weight):
    """x: (2,20) f32; w: (20,20) f32 in PyTorch (out,in) layout; b: (1,20) f32;
    rand_weight: (20,20) f32.  Returns a scalar f32 (X.sum() after halving)."""
    wt = w.T  # one-time transpose outside the kernel -> no in-kernel vxpose
    out = pl.pallas_call(
        fixed_hidden_mlp_kernel,
        out_shape=jax.ShapeDtypeStruct((1, 1), jnp.float32),
        # Arrays are tiny: whole-array blocks resident in VMEM, no grid.
        in_specs=[
            pl.BlockSpec(memory_space=pltpu.VMEM),  # x
            pl.BlockSpec(memory_space=pltpu.VMEM),  # w.T
            pl.BlockSpec(memory_space=pltpu.VMEM),  # b
            pl.BlockSpec(memory_space=pltpu.VMEM),  # rand_weight
        ],
        # Scalar result -> SMEM (avoids a padded (8,128) VMEM tile writeback).
        out_specs=pl.BlockSpec(memory_space=pltpu.SMEM),
    )(x, wt, b, rand_weight)
    return out[0, 0]


if __name__ == "__main__":
    key = jax.random.PRNGKey(0)
    kx, krw, kw, kb = jax.random.split(key, 4)

    # X = torch.rand(2, 20)
    x = jax.random.uniform(kx, (2, 20), dtype=jnp.float32)
    # self.rand_weight = torch.rand((20, 20))
    rand_weight = jax.random.uniform(krw, (20, 20), dtype=jnp.float32)
    # nn.Linear(20, 20): W, b ~ U(-1/sqrt(20), 1/sqrt(20))
    bound = 1.0 / (20.0 ** 0.5)
    w = jax.random.uniform(kw, (20, 20), minval=-bound, maxval=bound,
                           dtype=jnp.float32)
    b = jax.random.uniform(kb, (1, 20), minval=-bound, maxval=bound,
                           dtype=jnp.float32)

    y = fixed_hidden_mlp(x, w, b, rand_weight)
    jax.block_until_ready(y)
    print("KERNEL_OK")
</pallas_src>

<mosaic_0001>
module attributes {stable_mosaic.version = 11 : i64} {
  func.func @fixed_hidden_mlp_kernel(%arg0: memref<2x20xf32, #tpu.memory_space<vmem>>, %arg1: memref<20x20xf32, #tpu.memory_space<vmem>>, %arg2: memref<1x20xf32, #tpu.memory_space<vmem>>, %arg3: memref<20x20xf32, #tpu.memory_space<vmem>>, %arg4: memref<1x1xf32, #tpu.memory_space<smem>>) attributes {dimension_semantics = [], scalar_prefetch = 0 : i64, scratch_operands = 0 : i64, tpu.core_type = #tpu.core_type<tc>} {
    %c0 = arith.constant 0 : index
    %c0_0 = arith.constant 0 : index
    %0 = vector.load %arg0[%c0, %c0_0] : memref<2x20xf32, #tpu.memory_space<vmem>>, vector<2x20xf32>
    %c0_1 = arith.constant 0 : index
    %c0_2 = arith.constant 0 : index
    %1 = vector.load %arg1[%c0_1, %c0_2] : memref<20x20xf32, #tpu.memory_space<vmem>>, vector<20x20xf32>
    %c0_3 = arith.constant 0 : index
    %c0_4 = arith.constant 0 : index
    %2 = vector.load %arg2[%c0_3, %c0_4] : memref<1x20xf32, #tpu.memory_space<vmem>>, vector<1x20xf32>
    %c0_5 = arith.constant 0 : index
    %c0_6 = arith.constant 0 : index
    %3 = vector.load %arg3[%c0_5, %c0_6] : memref<20x20xf32, #tpu.memory_space<vmem>>, vector<20x20xf32>
    %cst = arith.constant dense<0.000000e+00> : vector<2x20xf32>
    %4 = tpu.matmul %0, %1, %cst {dimension_numbers = #tpu.dot_dimension_numbers<[1], [0], [0], [1], [0, 0, 1, 1], [], []>} : vector<2x20xf32>, vector<20x20xf32>, vector<2x20xf32> -> vector<2x20xf32>
    %5 = vector.broadcast %2 : vector<1x20xf32> to vector<2x20xf32>
    %6 = arith.addf %4, %5 : vector<2x20xf32>
    %cst_7 = arith.constant dense<0.000000e+00> : vector<2x20xf32>
    %7 = tpu.matmul %6, %3, %cst_7 {dimension_numbers = #tpu.dot_dimension_numbers<[1], [0], [0], [1], [0, 0, 1, 1], [], []>} : vector<2x20xf32>, vector<20x20xf32>, vector<2x20xf32> -> vector<2x20xf32>
    %cst_8 = arith.constant 1.000000e+00 : f32
    %8 = vector.broadcast %cst_8 : f32 to vector<2x20xf32>
    %9 = arith.addf %7, %8 : vector<2x20xf32>
    %cst_9 = arith.constant 0.000000e+00 : f32
    %10 = vector.broadcast %cst_9 : f32 to vector<2x20xf32>
    %11 = arith.maximumf %9, %10 : vector<2x20xf32>
    %cst_10 = arith.constant dense<0.000000e+00> : vector<2x20xf32>
    %12 = tpu.matmul %11, %1, %cst_10 {dimension_numbers = #tpu.dot_dimension_numbers<[1], [0], [0], [1], [0, 0, 1, 1], [], []>} : vector<2x20xf32>, vector<20x20xf32>, vector<2x20xf32> -> vector<2x20xf32>
    %13 = vector.broadcast %2 : vector<1x20xf32> to vector<2x20xf32>
    %14 = arith.addf %12, %13 : vector<2x20xf32>
    %15 = math.absf %14 : vector<2x20xf32>
    %16 = vector.shape_cast %15 : vector<2x20xf32> to vector<1x2x20xf32>
    %cst_11 = arith.constant dense<0.000000e+00> : vector<1xf32>
    %17 = vector.multi_reduction <add>, %16, %cst_11 [1, 2] : vector<1x2x20xf32> to vector<1xf32>
    %18 = vector.shape_cast %17 : vector<1xf32> to vector<1x1x1xf32>
    %19 = vector.extract %18[0, 0, 0] : f32 from vector<1x1x1xf32>
    %20 = vector.broadcast %19 : f32 to vector<1x1xf32>
    %21 = vector.shape_cast %14 : vector<2x20xf32> to vector<1x2x20xf32>
    %cst_12 = arith.constant dense<0.000000e+00> : vector<1xf32>
    %22 = vector.multi_reduction <add>, %21, %cst_12 [1, 2] : vector<1x2x20xf32> to vector<1xf32>
    %23 = vector.shape_cast %22 : vector<1xf32> to vector<1x1x1xf32>
    %24 = vector.extract %23[0, 0, 0] : f32 from vector<1x1x1xf32>
    %25 = vector.broadcast %24 : f32 to vector<1x1xf32>
    %cst_13 = arith.constant 1.000000e+00 : f32
    %26 = vector.broadcast %cst_13 : f32 to vector<1x1xf32>
    %27 = arith.maximumf %20, %26 : vector<1x1xf32>
    %28 = math.log %27 : vector<1x1xf32>
    %cst_14 = arith.constant 2.000000e+00 : f32
    %29 = math.log %cst_14 : f32
    %30 = vector.broadcast %29 : f32 to vector<1x1xf32>
    %31 = arith.divf %28, %30 : vector<1x1xf32>
    %32 = math.ceil %31 : vector<1x1xf32>
    %cst_15 = arith.constant 0.000000e+00 : f32
    %33 = vector.broadcast %cst_15 : f32 to vector<1x1xf32>
    %34 = arith.maximumf %32, %33 : vector<1x1xf32>
    %cst_16 = arith.constant 0.000000e+00 : f32
    %35 = vector.broadcast %cst_16 : f32 to vector<1x1xf32>
    %36 = arith.subf %35, %34 : vector<1x1xf32>
    %37 = math.exp2 %36 : vector<1x1xf32>
    %38 = arith.mulf %20, %37 : vector<1x1xf32>
    %cst_17 = arith.constant 1.000000e+00 : f32
    %39 = vector.broadcast %cst_17 : f32 to vector<1x1xf32>
    %40 = arith.cmpf ogt, %38, %39 : vector<1x1xf32>
    %cst_18 = arith.constant 0.000000e+00 : f32
    %41 = vector.broadcast %cst_18 : f32 to vector<1x1xf32>
    %42 = arith.cmpf ogt, %34, %41 : vector<1x1xf32>
    %cst_19 = arith.constant 2.000000e+00 : f32
    %43 = vector.broadcast %cst_19 : f32 to vector<1x1xf32>
    %44 = arith.mulf %37, %43 : vector<1x1xf32>
    %45 = arith.mulf %20, %44 : vector<1x1xf32>
    %cst_20 = arith.constant 1.000000e+00 : f32
    %46 = vector.broadcast %cst_20 : f32 to vector<1x1xf32>
    %47 = arith.cmpf ole, %45, %46 : vector<1x1xf32>
    %48 = arith.andi %42, %47 : vector<1x1xi1>
    %cst_21 = arith.constant dense<true> : vector<1x1xi1>
    %49 = arith.xori %40, %cst_21 : vector<1x1xi1>
    %50 = arith.andi %48, %49 : vector<1x1xi1>
    %cst_22 = arith.constant 5.000000e-01 : f32
    %51 = vector.broadcast %cst_22 : f32 to vector<1x1xf32>
    %52 = arith.mulf %37, %51 : vector<1x1xf32>
    %cst_23 = arith.constant 2.000000e+00 : f32
    %53 = vector.broadcast %cst_23 : f32 to vector<1x1xf32>
    %54 = arith.mulf %37, %53 : vector<1x1xf32>
    %55 = arith.select %50, %54, %37 : vector<1x1xi1>, vector<1x1xf32>
    %56 = arith.select %40, %52, %55 : vector<1x1xi1>, vector<1x1xf32>
    %57 = arith.mulf %25, %56 : vector<1x1xf32>
    %58 = vector.extract %57[0, 0] : f32 from vector<1x1xf32>
    %c0_24 = arith.constant 0 : index
    %c0_25 = arith.constant 0 : index
    %59 = memref.load %arg4[%c0_24, %c0_25] : memref<1x1xf32, #tpu.memory_space<smem>>
    memref.store %58, %arg4[%c0_24, %c0_25] : memref<1x1xf32, #tpu.memory_space<smem>>
    return
  }
}

</mosaic_0001>

<bundles_post_ra>
// kernel: tpu_custom_call.1
= control target key start
LH: loop header
LB: loop body
LE: loop exit
PB: predicated region body
PF: predicated region fallthrough
CT: control target
= control target key end

     0   :  { %9 = vsyncpa [#allocation3], 0  ;;  %s560_s0 = inlined_call_operand.hbm [shape: f32[2,20], index: 0, kind: input, shape index: {}]   ;;  %s561_s1 = inlined_call_operand.hbm [shape: f32[20,20], index: 1, kind: input, shape index: {}]   ;;  %s562_s2 = inlined_call_operand.vmem [shape: f32[1,20], index: 2, kind: input, shape index: {}]   ;;  %s563_s3 = inlined_call_operand.hbm [shape: f32[20,20], index: 3, kind: input, shape index: {}]   ;;  %s564_s4 = inlined_call_operand.hbm [shape: f32[1,1], index: 4, kind: output, shape index: {}]  }
   0x1   :  { %10 = vsyncpa [#allocation6], 0 }
   0x2   :  { %11 = vsyncpa [#allocation4], 0  ;;  %s502_s15 = smov [#allocation5]  }
   0x3   :  { %s27_s16 = sshll.u32 %s502_s15, 4  ;;  %s28_s16 = int_to_ptr.vmem [resolvable:$true] %s27_s16 }
   0x4   :  { %s436_s17 = scalar_lea.vmem %s28_s16, 384  ;;  %p441_p1 = scmp.lt.s32.totalorder %s28_s16, %s28_s16 }
   0x5   :  { %p437_p0 = scmp.ne.s32.totalorder %s28_s16, %s436_s17  ;;  %p442_p2 = scmp.lt.s32.totalorder %s436_s17, %s436_s17 }
   0x7   :  { %p443_p3 = por %p442_p2, %p441_p1 }
   0x9   :  { %p444_p4 = pnand %p443_p3, %p437_p0 }
   0xb   :  { %447 = shalt.err (!%p444_p4)
}
   0xc   :  { %s503_s18 = smov 128   ;;  %s504_s19 = smov 8  }
   0xd   :  { %33 = dma.hbm_to_vmem [thread:$0]  %s561_s1, 384, %s28_s16, [#allocation6], %s503_s18, %s503_s18, %s504_s19  }
   0xe   :  { %s505_s22 = smov [#allocation2]   ;;  %s506_s24 = smov [#allocation7]  }
   0xf   :  { %s18_s23 = sshll.u32 %s505_s22, 4  ;;  %s41_s25 = sshll.u32 %s506_s24, 4  ;;  %s19_s23 = int_to_ptr.vmem [resolvable:$true] %s18_s23  ;;  %s42_s25 = int_to_ptr.vmem [resolvable:$true] %s41_s25 }
  0x10   :  { %s456_s26 = scalar_lea.vmem %s19_s23, 32  ;;  %p461_p6 = scmp.lt.s32.totalorder %s19_s23, %s19_s23 }
  0x11   :  { %p457_p5 = scmp.ne.s32.totalorder %s19_s23, %s456_s26  ;;  %p462_p7 = scmp.lt.s32.totalorder %s456_s26, %s456_s26 }
  0x13   :  { %p463_p8 = por %p462_p7, %p461_p6 }
  0x15   :  { %p464_p9 = pnand %p463_p8, %p457_p5 }
  0x17   :  { %467 = shalt.err (!%p464_p9)
}
  0x18   :  { %21 = dma.hbm_to_vmem [thread:$0]  %s560_s0, 32, %s19_s23, [#allocation3]  }
  0x19   :  { %s476_s29 = scalar_lea.vmem %s42_s25, 384  ;;  %p481_p11 = scmp.lt.s32.totalorder %s42_s25, %s42_s25 }
  0x1a   :  { %p477_p10 = scmp.ne.s32.totalorder %s42_s25, %s476_s29  ;;  %p482_p12 = scmp.lt.s32.totalorder %s476_s29, %s476_s29 }
  0x1c   :  { %p483_p13 = por %p482_p12, %p481_p11 }
  0x1e   :  { %p484_p0 = pnand %p483_p13, %p477_p10 }
  0x20   :  { %487 = shalt.err (!%p484_p0)
}
  0x21   :  { %47 = dma.hbm_to_vmem [thread:$0]  %s563_s3, 384, %s42_s25, [#allocation6], %s503_s18, %s503_s18, %s504_s19  }
  0x22   :  { %496 = dma.done.wait [#allocation3], 32  }
  0x23   :  { %497 = vsyncadd [#allocation3], 4294967264 }
  0x24   :  { %498 = dma.done.wait [#allocation6], 768  }
  0x25   :  { %499 = vsyncadd [#allocation6], 4294966528  ;;  %v507_v0 = vmov 0.0   ;;  %vm508_vm0 = vmmov 0   ;;  %vm75_vm1 = vcmask 1043456   ;;  %v59_v2 = vld [vmem:[#allocation5 + $0x8] sm:$0xff] }
  0x26   :  { %382 = vmatprep.subr.mxu0 %v507_v0  ;;  %388 = vmatprep.mubr.msk.f32.mxu0 %vm508_vm0, %v507_v0  ;;  %v60_v1 = vld [vmem:[#allocation5 + $0x10] sm:$0xf]  ;;  %v64_v3 = vld [vmem:[#allocation7 + $0x10] sm:$0xf]  ;;  %v58_v4 = vld [vmem:[#allocation5] sm:$0xff]  ;;  %vm71_vm2 = vcmask 162816  }
  0x27   :  { %391 = vmatprep.subr.mxu1 %v507_v0  ;;  %397 = vmatprep.mubr.msk.f32.mxu1 %vm508_vm0, %v507_v0  ;;  %v57_v5 = vld [vmem:[#allocation2] sm:$0x3]  ;;  %v63_v6 = vld [vmem:[#allocation7 + $0x8] sm:$0xff]  ;;  %vm300_vm3 = vcmask 156672   ;;  %vm509_vm7 = vmmov 1   ;;  %s510_s7 = smov [#allocation8]  }
  0x28   :  { %383 = vmatpush3.msk.msra.mxu0 %vm75_vm1, %v60_v1  ;;  %392 = vmatpush3.msk.msra.mxu1 %vm75_vm1, %v64_v3  ;;  %v62_v7 = vld [vmem:[#allocation7] sm:$0xff] }
  0x29   :  { %384 = vmatprep.subr.mxu0 %v507_v0  ;;  %393 = vmatprep.subr.mxu1 %v507_v0  ;;  %v363_v8 = vld [vmem:[%s562_s2] ss:$0 sm:$0xff] }
  0x2a   :  { %385 = vmatpush3.msra.mxu0 %v59_v2  ;;  %394 = vmatpush3.msra.mxu1 %v63_v6 }
  0x2b   :  { %386 = vmatprep.subr.mxu0 %v507_v0  ;;  %395 = vmatprep.subr.mxu1 %v507_v0 }
  0x2c   :  { %387 = vmatpush3.msra.mxu0 %v58_v4  ;;  %396 = vmatpush3.msra.mxu1 %v62_v7 }
  0x2d   :  { %389 = vmatmul.mubr.msk.f32.vlgmr.msra.gmra.mxu0 %vm71_vm2, %v57_v5  ;;  %400 = vmatprep.subr.mxu0 %v507_v0 }
  0x2e   :  { %401 = vmatpush3.msk.msra.mxu0 %vm75_vm1, %v60_v1  ;;  %406 = vmatprep.mubr.msk.f32.mxu0 %vm508_vm0, %v507_v0 }
  0x2f   :  { %402 = vmatprep.subr.mxu0 %v507_v0 }
  0x30   :  { %403 = vmatpush3.msra.mxu0 %v59_v2 }
  0x31   :  { %404 = vmatprep.subr.mxu0 %v507_v0 }
  0x32   :  { %405 = vmatpush3.msra.mxu0 %v58_v4 }
  0xed   :  { %v145_v9 = vpop.f32.mrf.mxu0 }
  0xee   :  { %v146_v10 = vadd.f32 %v363_v8, %v145_v9 }
  0xef   :  { %v390_v11 = vpop.f32.mrf.mxu0 }
  0xf0   :  { %398 = vmatmul.mubr.msk.f32.vlgmr.msra.gmra.mxu1 %vm71_vm2, %v146_v10 }
 0x1b0   :  { %v221_v12 = vpop.f32.mrf.mxu1 }
 0x1b1   :  { %v222_v13 = vadd.f32 1.0, %v221_v12 }
 0x1b2   :  { %v399_v14 = vpop.f32.mrf.mxu1 }
 0x1b3   :  { %v225_v15 = vmax.f32 %v222_v13, 0.0 }
 0x1b5   :  { %407 = vmatmul.mubr.msk.f32.vlgmr.msra.gmra.mxu0 %vm71_vm2, %v225_v15 }
 0x275   :  { %v295_v16 = vpop.f32.mrf.mxu0 }
 0x276   :  { %v296_v17 = vadd.f32 %v363_v8, %v295_v16 }
 0x277   :  { %v408_v18 = vpop.f32.mrf.mxu0 }
 0x278   :  { %v299_v19 = vand.u32 2147483647, %v296_v17  ;;  %v312_v21 = vsel %vm300_vm3, %v296_v17, 0.0 }
 0x27a   :  { %v301_v20 = vsel %vm300_vm3, %v299_v19, 0.0 }
 0x27b   :  { %302 = vadd.xlane.f32.xlu0 %v301_v20 }
 0x27f   :  { %313 = vadd.xlane.f32.xlu0 %v312_v21 }
 0x304   :  { %v303_v22 = vpop.xlane.xlu0 %302 }
 0x305   :  { %v304_v23 = vrot.slane %v303_v22, 4 }
 0x307   :  { %v305_v24 = vadd.f32 %v304_v23, %v303_v22 }
 0x308   :  { %v314_v25 = vpop.xlane.xlu0 %313 }
 0x309   :  { %v306_v26 = vrot.slane %v305_v24, 2  ;;  %v315_v27 = vrot.slane %v314_v25, 4 }
 0x30b   :  { %v316_v28 = vadd.f32 %v315_v27, %v314_v25  ;;  %v307_v29 = vadd.f32 %v306_v26, %v305_v24 }
 0x30d   :  { %v317_v30 = vrot.slane %v316_v28, 2  ;;  %v308_v31 = vrot.slane %v307_v29, 1 }
 0x30f   :  { %v318_v32 = vadd.f32 %v317_v30, %v316_v28  ;;  %v309_v33 = vadd.f32 %v308_v31, %v307_v29 }
 0x311   :  { %409 = vpush %v309_v33  ;;  %v319_v34 = vrot.slane %v318_v32, 1 }
 0x313   :  { %v320_v35 = vadd.f32 %v319_v34, %v318_v32 }
 0x315   :  { %411 = vpush %v320_v35 }
 0x342   :  { %s410_s2 = spop %409 }
 0x343   :  { %v311_v36 = vstv %s410_s2 }
 0x344   :  { %v323_v37 = vmax.f32 %v311_v36, 1.0 }
 0x346   :  { %424 = vlog2.f32 %v323_v37  ;;  %s412_s5 = spop %411 }
 0x347   :  { %v322_v50 = vstv %s412_s5 }
 0x353   :  { %v425_v38 = vpop.eup %424 }
 0x354   :  { %v325_v39 = vmul.f32 0.6931472, %v425_v38 }
 0x356   :  { %v327_v40 = vmul.f32 1.442695, %v325_v39 }
 0x358   :  { %v328_v41 = vceil.f32 %v327_v40 }
 0x35a   :  { %v329_v42 = vmax.f32 %v328_v41, 0.0 }
 0x35c   :  { %v330_v43 = vsub.f32 0.0, %v329_v42  ;;  %vm334_vm5 = vcmp.gt.f32.partialorder %v329_v42, 0.0 }
 0x35e   :  { %426 = vpow2.f32 %v330_v43 }
 0x36b   :  { %v427_v44 = vpop.eup %426 }
 0x36c   :  { %v332_v45 = vmul.f32 %v427_v44, %v311_v36  ;;  %v335_v46 = vmul.f32 2.0, %v427_v44  ;;  %v341_v48 = vmul.f32 0.5, %v427_v44 }
 0x36e   :  { %vm333_vm4 = vcmp.gt.f32.partialorder %v332_v45, 1.0  ;;  %v336_v47 = vmul.f32 %v335_v46, %v311_v36 }
 0x36f   :  { %vm339_vm8 = vmxor %vm333_vm4, %vm509_vm7 }
 0x370   :  { %vm337_vm6 = vcmp.le.f32.partialorder %v336_v47, 1.0 }
 0x371   :  { %vm338_vm9 = vmand %vm334_vm5, %vm337_vm6 }
 0x372   :  { %vm340_vm10 = vmand %vm338_vm9, %vm339_vm8 }
 0x373   :  { %v342_v49 = vsel %vm340_vm10, %v335_v46, %v427_v44 }
 0x374   :  { %v343_v51 = vsel %vm333_vm4, %v341_v48, %v342_v49 }
 0x375   :  { %v344_v52 = vmul.f32 %v343_v51, %v322_v50 }
 0x377   :  { %413 = vpush %v344_v52 }
 0x3a8   :  { %s414_s6 = spop %413 }
 0x3a9   :  { %347 = sst [smem:[#allocation8]] %s414_s6 }
 0x3aa   :  { %355 = dma.smem_to_hbm %s510_s7, 16, %s564_s4, [#allocation4]  }
 0x3ab   :  { %500 = dma.done.wait [#allocation4], 16  }
 0x3ac   :  { %501 = vsyncadd [#allocation4], 4294967280 }
 0x3ad   :  { %359 = sfence }
 0x3ae   :  { %360 = vsyncpa [#allocation3], 1 }
 0x3af   :  { %361 = vsyncpa [#allocation6], 1 }
 0x3b0   :  { %362 = vsyncpa [#allocation4], 1 }

</bundles_post_ra>
